<compile_context>
chip_gen: v5e
topology: v5e:2x2
jax: 0.10.0
libtpu: 0.0.40
codegen_flags: <defaults>
</compile_context>

<pallas_src>
import functools
import math

import jax
import jax.numpy as jnp
from jax.experimental import pallas as pl
from jax.experimental.pallas import tpu as pltpu


_MAX_TILE_ROWS = 8192
_MIN_GRID_STEPS = 4
_VMEM_BUDGET_BYTES = 12 * 1024 * 1024      # working set (I/O + intermediates)
_VMEM_LIMIT_BYTES = 28 * 1024 * 1024       # explicit scoped-VMEM limit


def _softmax_fp8_kernel(x_ref, o_ref, *, scale_in, scale_out, max_on_raw,
                        exp_dtype):
    # x_ref: (TR, K) input tile; o_ref: (TR, K) fp8 output tile.
    x = x_ref[...].astype(jnp.float32)
    if max_on_raw:
        # scale_in > 0  =>  max(scale_in * x) == scale_in * max(x):
        # saves one full-tile VPU multiply.
        m = jnp.max(x, axis=-1, keepdims=True)
        arg = (x - m) * scale_in
    else:
        xs = x * scale_in
        m = jnp.max(xs, axis=-1, keepdims=True)
        arg = xs - m
    # exp in bf16 on chips with a bf16 EUP (v6e/v7x); post-max args are <= 0 so
    # e is in (0, 1] and bf16 precision dwarfs the fp8 e4m3 output precision.
    e = jnp.exp(arg.astype(exp_dtype))
    # Accumulate the row sum in f32 regardless of exp dtype.
    s = jnp.sum(e, axis=-1, keepdims=True, dtype=jnp.float32)
    # EUP approx reciprocal; fold the output scale into the (TR, 1) column so
    # only a single full-tile multiply remains before the fused fp8 store.
    inv = (pl.reciprocal(s, approx=True) * scale_out).astype(exp_dtype)
    o_ref[...] = (e * inv).astype(o_ref.dtype)


def _round_up(a, m):
    return ((a + m - 1) // m) * m


def _default_exp_in_bf16():
    # bf16 exp only helps (and is only native) on v6e / v7x; v5e has no bf16
    # EUP/VPU so keep its exp path in f32.
    try:
        kind = jax.devices()[0].device_kind.lower()
    except Exception:  # pragma: no cover - defensive, keep correct path
        return False
    return ("v6" in kind) or ("v7" in kind)


def _choose_tile_rows(rows, k, in_itemsize, exp_itemsize, *,
                      max_tile_rows=_MAX_TILE_ROWS,
                      vmem_budget_bytes=_VMEM_BUDGET_BYTES,
                      min_grid_steps=_MIN_GRID_STEPS):
    """Pick a row tile: large (HBM roofline), 32-aligned (dense fp8 stores),
    VMEM-safe (I/O double buffers + in-kernel intermediates), and yielding at
    least `min_grid_steps` grid steps when the problem is big enough (DMA
    overlap + v7x megacore)."""
    if rows <= 32:
        # Tiny problem: one full-extent block (full dim satisfies the (8,128)
        # rule; perf is irrelevant at this size).
        return int(rows)
    # Per-row VMEM bytes:
    #   2 * K * in_itemsize   double-buffered input tile
    #   2 * K * 1             double-buffered fp8 output tile
    #   K * 4                 f32 upcast of x inside the kernel
    #   K * exp_itemsize      e (exp result) inside the kernel
    per_row = k * (2 * in_itemsize + 2 * 1 + 4 + exp_itemsize)
    cap = vmem_budget_bytes // max(per_row, 1)
    cap = max(32, min(max_tile_rows, (cap // 32) * 32))
    # Aim for >= min_grid_steps steps; keep tr a multiple of 32.
    target = _round_up(pl.cdiv(rows, min_grid_steps), 32)
    return int(max(32, min(cap, target)))


def patched_softmax_fp8(x, dim=None, inv_attn_head=None,
                        scale_input=1.0, output_scale=1.0,
                        exp_in_bf16=None, max_tile_rows=_MAX_TILE_ROWS):
    """Pallas implementation of PatchedSoftmax.forward (QUANTIZE mode).

    scale_input  -> self.scale_input  (module hard-codes 1.0)
    output_scale -> mod_extra_config.scale.outputs[0]
                    (self.scale_output = 1 / output_scale)
    Returns an fp8 (float8_e4m3fn) tensor, mirroring quant_output().
    """
    if dim is None:
        dim = -1
    assert dim in (-1, x.ndim - 1), "kernel implements softmax over the last axis"

    scale_in = float(scale_input) * (float(inv_attn_head)
                                     if inv_attn_head is not None else 1.0)
    scale_out = 1.0 / float(output_scale)   # self.scale_output

    if exp_in_bf16 is None:
        exp_in_bf16 = _default_exp_in_bf16()
    exp_dtype = jnp.bfloat16 if exp_in_bf16 else jnp.float32

    orig_shape = x.shape
    k = orig_shape[-1]
    rows = math.prod(orig_shape[:-1]) if len(orig_shape) > 1 else 1
    x2d = x.reshape(rows, k)

    tr = _choose_tile_rows(rows, k, x2d.dtype.itemsize,
                           jnp.dtype(exp_dtype).itemsize,
                           max_tile_rows=max_tile_rows)
    grid = (pl.cdiv(rows, tr),)

    kernel = functools.partial(_softmax_fp8_kernel,
                               scale_in=scale_in, scale_out=scale_out,
                               max_on_raw=scale_in > 0.0,
                               exp_dtype=exp_dtype)

    # Ragged last block: Pallas masks the out-of-bounds rows' writeback; the
    # garbage rows compute an independent (discarded) per-row softmax, so no
    # host-side pad/slice copies are needed.
    # TODO(synk): for seq_k so large that even tr=32 exceeds the VMEM budget, a
    # K-axis grid with online (flash-style) max/sum accumulation and
    # pipeline_mode=pl.Buffered(3) on the input would be needed; not required
    # at attention-typical seq_k.
    out2d = pl.pallas_call(
        kernel,
        out_shape=jax.ShapeDtypeStruct((rows, k), jnp.float8_e4m3fn),
        grid_spec=pltpu.PrefetchScalarGridSpec(
            num_scalar_prefetch=0,
            grid=grid,
            in_specs=[pl.BlockSpec((tr, k), lambda i: (i, 0))],
            out_specs=pl.BlockSpec((tr, k), lambda i: (i, 0)),
        ),
        compiler_params=pltpu.CompilerParams(
            dimension_semantics=("parallel",),
            vmem_limit_bytes=_VMEM_LIMIT_BYTES),
    )(x2d)

    return out2d.reshape(orig_shape)


def _reference_f32(x, dim, inv_attn_head, scale_input, output_scale):
    s_in = scale_input * (inv_attn_head if inv_attn_head is not None else 1.0)
    y = jax.nn.softmax(x.astype(jnp.float32) * s_in, axis=dim)
    return y * (1.0 / output_scale)


def _check(out, x, inv_attn_head, scale_input, output_scale, tol, tag):
    ref = _reference_f32(x, -1, inv_attn_head, scale_input, output_scale)
    diff = float(jnp.max(jnp.abs(out.astype(jnp.float32) - ref)))
    assert out.dtype == jnp.float8_e4m3fn
    assert out.shape == x.shape
    assert diff <= tol, f"mismatch vs reference ({tag}): {diff}"


if __name__ == "__main__":
    key = jax.random.PRNGKey(0)
    k1, k2, k3 = jax.random.split(key, 3)

    # Deterministic "mod_extra_config" parameters (synthetic, not a checkpoint).
    scale_input = 1.0          # module hard-codes Tensor([1.0])
    output_scale = 0.5         # mod_extra_config.scale.outputs[0]

    # Case 1: attention-score-like f32 input, lane-dense seq_k, 64 rows ->
    # two full 32-row blocks (multi-step grid, no ragged block).
    B, H, SQ, SK = 2, 4, 8, 128
    x = jax.random.normal(k1, (B, H, SQ, SK), dtype=jnp.float32) * 3.0
    iah = 1.0 / (SK ** 0.5)
    out = jax.block_until_ready(
        patched_softmax_fp8(x, dim=-1, inv_attn_head=iah,
                            scale_input=scale_input, output_scale=output_scale))
    _check(out, x, iah, scale_input, output_scale, 0.15, "case1")

    # Case 2: 105 rows -> 4-step grid with a ragged last block (exercises the
    # masked writeback path that replaced the pad/slice copies).
    B2, H2, SQ2, SK2 = 3, 5, 7, 128
    x2 = jax.random.normal(k2, (B2, H2, SQ2, SK2), dtype=jnp.float32) * 3.0
    iah2 = 1.0 / (SK2 ** 0.5)
    out2 = jax.block_until_ready(
        patched_softmax_fp8(x2, dim=-1, inv_attn_head=iah2,
                            scale_input=scale_input, output_scale=output_scale))
    _check(out2, x2, iah2, scale_input, output_scale, 0.15, "case2")

    # Case 3: bf16 input (typical attention-score dtype), wider seq_k.
    B3, H3, SQ3, SK3 = 2, 3, 16, 256
    x3 = (jax.random.normal(k3, (B3, H3, SQ3, SK3), dtype=jnp.float32) * 3.0
          ).astype(jnp.bfloat16)
    iah3 = 1.0 / (SK3 ** 0.5)
    out3 = jax.block_until_ready(
        patched_softmax_fp8(x3, dim=-1, inv_attn_head=iah3,
                            scale_input=scale_input, output_scale=output_scale))
    _check(out3, x3, iah3, scale_input, output_scale, 0.15, "case3")

    print("KERNEL_OK")
</pallas_src>

<mosaic_0001>
module attributes {stable_mosaic.version = 11 : i64} {
  func.func @_softmax_fp8_kernel(%arg0: i32, %arg1: memref<32x128xf32, #tpu.memory_space<vmem>>, %arg2: memref<32x128xf8E4M3FN, #tpu.memory_space<vmem>>) attributes {dimension_semantics = [#tpu.dimension_semantics<parallel>], iteration_bounds = array<i64: 2>, scalar_prefetch = 0 : i64, scratch_operands = 0 : i64, tpu.core_type = #tpu.core_type<tc>, window_params = [{transform_indices = @transform_0, window_bounds = array<i64: 32, 128>}, {transform_indices = @transform_1, window_bounds = array<i64: 32, 128>}]} {
    %c0 = arith.constant 0 : index
    %c0_0 = arith.constant 0 : index
    %0 = vector.load %arg1[%c0, %c0_0] : memref<32x128xf32, #tpu.memory_space<vmem>>, vector<32x128xf32>
    %cst = arith.constant dense<0xFF800000> : vector<32xf32>
    %1 = vector.multi_reduction <maximumf>, %0, %cst [1] : vector<32x128xf32> to vector<32xf32>
    %2 = vector.shape_cast %1 : vector<32xf32> to vector<32x1xf32>
    %3 = vector.broadcast %2 : vector<32x1xf32> to vector<32x128xf32>
    %4 = arith.subf %0, %3 : vector<32x128xf32>
    %cst_1 = arith.constant 0.0883883461 : f32
    %5 = vector.broadcast %cst_1 : f32 to vector<32x128xf32>
    %6 = arith.mulf %4, %5 : vector<32x128xf32>
    %7 = math.exp %6 : vector<32x128xf32>
    %cst_2 = arith.constant dense<0.000000e+00> : vector<32xf32>
    %8 = vector.multi_reduction <add>, %7, %cst_2 [1] : vector<32x128xf32> to vector<32xf32>
    %9 = vector.shape_cast %8 : vector<32xf32> to vector<32x1xf32>
    %10 = tpu.reciprocal %9 {approx = true} : vector<32x1xf32> -> vector<32x1xf32>
    %cst_3 = arith.constant 2.000000e+00 : f32
    %11 = vector.broadcast %cst_3 : f32 to vector<32x1xf32>
    %12 = arith.mulf %10, %11 : vector<32x1xf32>
    %13 = vector.broadcast %12 : vector<32x1xf32> to vector<32x128xf32>
    %14 = arith.mulf %7, %13 : vector<32x128xf32>
    %15 = arith.truncf %14 : vector<32x128xf32> to vector<32x128xf8E4M3FN>
    %c0_4 = arith.constant 0 : index
    %c0_5 = arith.constant 0 : index
    %16 = vector.load %arg2[%c0_4, %c0_5] : memref<32x128xf8E4M3FN, #tpu.memory_space<vmem>>, vector<32x128xf8E4M3FN>
    tpu.vector_store %arg2[%c0_4, %c0_5], %15 {strides = array<i32>} : memref<32x128xf8E4M3FN, #tpu.memory_space<vmem>>, vector<32x128xf8E4M3FN>,
    return
  }
  func.func @transform_0(%arg0: i32) -> (i32, i32) {
    %c0_i32 = arith.constant 0 : i32
    %c0_i32_0 = arith.constant 0 : i32
    return %arg0, %c0_i32 : i32, i32
  }
  func.func @transform_1(%arg0: i32) -> (i32, i32) {
    %c0_i32 = arith.constant 0 : i32
    %c0_i32_0 = arith.constant 0 : i32
    return %arg0, %c0_i32 : i32, i32
  }
}

</mosaic_0001>

<bundles_post_ra>
// kernel: tpu_custom_call.1
= control target key start
LH: loop header
LB: loop body
LE: loop exit
PB: predicated region body
PF: predicated region fallthrough
CT: control target
= control target key end

     0   :  { %6 = vsyncpa [#allocation3], 0  ;;  %s637_s0 = inlined_call_operand.hbm [shape: f32[64,128], index: 0, kind: input, shape index: {}]   ;;  %s638_s1 = inlined_call_operand.hbm [shape: f8e4m3fn[64,128], index: 1, kind: output, shape index: {}]  }
   0x1   :  { %8 = vsyncpa [#allocation3 + $0x1], 0 }
   0x2   :  { %9 = vsyncpa [#allocation4], 0 }
   0x3   :  { %11 = vsyncpa [#allocation4 + $0x1], 0  ;;  %s501_s6 = smov 0   ;;  %s503_s7 = smov 0  }
   0x4   :  { %s505_s8 = smov 0   ;;  %s507_s9 = smov 0  }
   0x5 LB: > { %s522_s10 = sadd.s32 4294967295, %s487_s9   ;;  %s313_s11 = sadd.s32 4294967294, %s487_s9   ;;  %s487_s9 = sphi %s507_s9, %s650_s9   ;;  %s483_s8 = sphi %s505_s8, %s649_s8   ;;  %s479_s7 = sphi %s503_s7, %s648_s7   ;;  %s475_s6 = sphi %s501_s6, %s647_s6  }
   0x6   : > { %s526_s12 = sadd.s32 1, %s487_s9   ;;  %s24_s13 = sadd.s32 1, %s483_s8 }
   0x7   : > { %s21_s14 = ssub.s32 %s487_s9, %s526_s12  ;;  %p31_p0 = scmp.ne.s32.totalorder %s483_s8, %s479_s7 }
   0x8   : > { %p22_p1 = scmp.eq.s32.totalorder %s21_s14, 0  ;;  %p32_p2 = scmp.eq.s32.totalorder %s487_s9, 0 }
   0x9   : > { %p37_p3 = scmp.ne.s32.totalorder %s479_s7, %s475_s6  ;;  %p38_p4 = scmp.eq.s32.totalorder %s522_s10, 0 }
   0xa   : > { %s538_s15 = scalar_select %p22_p1, %s483_s8, %s24_s13  }
   0xb   : > { %p540_p5 = por %p32_p2, %p31_p0  ;;  %p544_p6 = por %p38_p4, %p37_p3 }
   0xc   : > { %p61_p7 = scmp.eq.s32.totalorder %s522_s10, 1  ;;  %p67_p8 = scmp.eq.s32.totalorder %s313_s11, 1 }
   0xd   : > { %p339_p10 = scmp.lt.s32.totalorder %s487_s9, 2  ;;  %s87_s20 = sand.u32 1, %s483_s8  }
   0xe   : > { %p551_p11 = por %p61_p7, %p31_p0  ;;  %p555_p12 = por %p67_p8, %p37_p3 }
   0xf   : > { %s326_s21 = sshll.u32 %s487_s9, 5  ;;  %s316_s22 = sshll.u32 %s87_s20, 5 }
  0x10   : > { %s96_s25 = scalar_lea.hbm %s637_s0, %s326_s21  ;;  %s91_s27 = scalar_lea.vmem [#allocation2], %s316_s22 }
  0x11   : > { %s97_s26 = sshll.u32 %s96_s25, 4  ;;  %s99_s28 = sshll.u32 %s91_s27, 4  ;;  %s98_s26 = int_to_ptr.hbm [resolvable:$true] %s97_s26  ;;  %s100_s28 = int_to_ptr.vmem [resolvable:$true] %s99_s28 }
  0x12   : > { %p566_p13 = pnand %p339_p10, %p540_p5  ;;  %p319_p0 = scmp.ge.s32.totalorder %s487_s9, 1 }
  0x13   : > { %p107_p1 = scmp.lt.s32.totalorder %s487_s9, 3  ;;  %s88_s30 = scalar_lea.sflag [#allocation3], %s87_s20 }
  0x14   : > { %s391_s2 = sshra.s32 %s98_s26, 4  ;;  %p395_p3 = pneg %p566_p13  ;;  %s392_s2 = int_to_ptr.hbm [resolvable:$true] %s391_s2 }
  0x15   : > { %s393_s3 = scalar_lea.hbm %s392_s2, 32  ;;  %s398_s11 = scalar_lea.hbm %s637_s0, 64 }
  0x16   : > { %p394_p2 = scmp.ne.s32.totalorder %s392_s2, %s393_s3  ;;  %p399_p5 = scmp.lt.s32.totalorder %s392_s2, %s637_s0 }
  0x17   : > { %p400_p8 = scmp.lt.s32.totalorder %s398_s11, %s393_s3 }
  0x18   : > { %p396_p4 = pnand %p395_p3, %p394_p2 }
  0x19   : > { %p401_p10 = por %p400_p8, %p399_p5 }
  0x1a   : > { %p397_p7 = pneg %p396_p4 }
  0x1c   : > { %p402_p9 = pnand %p401_p10, %p397_p7 }
  0x1e   : > { %405 = shalt.err (!%p402_p9)
}
  0x1f   : > { %s489_s16 = smov 128   ;;  %s490_s20 = smov 8  }
  0x20   : > { %334 = dma.hbm_to_vmem [thread:$0]  (!%p566_p13), %s98_s26, 512, %s100_s28, %s88_s30, %s489_s16, %s489_s16, %s490_s20  }
  0x21   : > { %p108_p2 = pnand %p319_p0, %p107_p1 }
  0x22   : > { %s587_s21 = sand.u32 (!%p108_p2), 1, %s479_s7  }
  0x23   : > { %111 = sbr.rel (%p108_p2) target bundleno = 320 (0x140), region = 24  ;;  %s320_s22 = sshll.u32 (!%p108_p2), %s587_s21, 5 }
  0x24   : > { %s114_s23 = scalar_lea.sflag (!%p108_p2), [#allocation3], %s587_s21  ;;  %s117_s24 = scalar_lea.vmem (!%p108_p2), [#allocation2], %s320_s22 }
  0x28   : > { %466 = dma.done.wait (%p544_p6), %s114_s23, 512  }
  0x29   : > { %468 = vsyncadd (%p544_p6), %s114_s23, 4294966784  ;;  %v140_v0 = vld [vmem:[%s117_s24 + $0x10] sm:$0xff]  ;;  %v138_v1 = vld [vmem:[%s117_s24] sm:$0xff]  ;;  %s321_s17 = sshll.u32 %s587_s21, 3  ;;  %s323_s25 = sshll.u32 %s522_s10, 3 }
  0x2a   : > { %146 = vmax.xlane.f32.xlu1 %v140_v0  ;;  %142 = vmax.xlane.f32.xlu0 %v138_v1  ;;  %v141_v2 = vld [vmem:[%s117_s24 + $0x18] sm:$0xff]  ;;  %v139_v3 = vld [vmem:[%s117_s24 + $0x8] sm:$0xff]  ;;  %s238_s10 = scalar_lea.hbm %s638_s1, %s323_s25  ;;  %s136_s28 = scalar_lea.vmem [#allocation5], %s321_s17 }
  0x2b   : > { %s240_s29 = sshll.u32 %s136_s28, 4  ;;  %s242_s30 = sshll.u32 %s238_s10, 4  ;;  %s241_s29 = int_to_ptr.vmem [resolvable:$true] %s240_s29  ;;  %s243_s30 = int_to_ptr.hbm [resolvable:$true] %s242_s30 }
  0x2c   : > { %s228_s2 = scalar_lea.sflag [#allocation4], %s587_s21  ;;  %s435_s3 = sshra.s32 %s243_s30, 4  ;;  %s436_s3 = int_to_ptr.hbm [resolvable:$true] %s435_s3 }
  0x2d   : > { %s437_s4 = scalar_lea.hbm %s436_s3, 8  ;;  %s441_s13 = scalar_lea.hbm %s638_s1, 16 }
  0x2e   : > { %p438_p6 = scmp.ne.s32.totalorder %s436_s3, %s437_s4  ;;  %p442_p0 = scmp.lt.s32.totalorder %s436_s3, %s638_s1 }
  0x2f   : > { %p443_p1 = scmp.lt.s32.totalorder %s441_s13, %s437_s4 }
  0x30   : > { %p439_p9 = pnand %p438_p6, %p551_p11 }
  0x31   : > { %p444_p3 = por %p443_p1, %p442_p0 }
  0x32   : > { %148 = vmax.xlane.f32.xlu1 %v141_v2  ;;  %144 = vmax.xlane.f32.xlu0 %v139_v3  ;;  %p440_p13 = pneg %p439_p9 }
  0x34   : > { %p445_p4 = pnand %p444_p3, %p440_p13 }
  0x9d   : > { %v147_v4 = vpop.xlane.xlu1 %146  ;;  %v143_v5 = vpop.xlane.xlu0 %142 }
  0x9e   : > { %v152_v6 = vsub.f32 %v140_v0, %v147_v4  ;;  %v150_v7 = vsub.f32 %v138_v1, %v143_v5 }
  0xa0   : > { %v156_v8 = vmul.f32 0.088388346, %v152_v6  ;;  %v154_v9 = vmul.f32 0.088388346, %v150_v7 }
  0xa2   : > { %v162_v10 = vmul.f32 1.442695, %v156_v8  ;;  %v158_v11 = vmul.f32 1.442695, %v154_v9 }
  0xa4   : > { %375 = vpow2.f32 %v162_v10 }
  0xa5   : > { %377 = vpow2.f32 %v158_v11  ;;  %v149_v12 = vpop.xlane.xlu1 %148  ;;  %v145_v13 = vpop.xlane.xlu0 %144 }
  0xa6   : > { %v153_v14 = vsub.f32 %v141_v2, %v149_v12  ;;  %v151_v15 = vsub.f32 %v139_v3, %v145_v13 }
  0xa8   : > { %v157_v16 = vmul.f32 0.088388346, %v153_v14  ;;  %v155_v17 = vmul.f32 0.088388346, %v151_v15 }
  0xaa   : > { %v376_v18 = vpop.eup %375  ;;  %v164_v19 = vmul.f32 1.442695, %v157_v16  ;;  %v160_v20 = vmul.f32 1.442695, %v155_v17 }
  0xab   : > { %v378_v21 = vpop.eup %377  ;;  %170 = vadd.xlane.f32.xlu0 %v376_v18 }
  0xac   : > { %379 = vpow2.f32 %v164_v19  ;;  %166 = vadd.xlane.f32.xlu2 %v378_v21 }
  0xad   : > { %381 = vpow2.f32 %v160_v20 }
  0xb2   : > { %v380_v22 = vpop.eup %379 }
  0xb3   : > { %v382_v23 = vpop.eup %381  ;;  %172 = vadd.xlane.f32.xlu1 %v380_v22 }
  0xb4   : > { %168 = vadd.xlane.f32.xlu2 %v382_v23 }
 0x11e   : > { %v171_v24 = vpop.xlane.xlu0 %170 }
 0x11f   : > { %v167_v25 = vpop.xlane.xlu2 %166  ;;  %383 = vrcp.f32 %v171_v24 }
 0x120   : > { %385 = vrcp.f32 %v167_v25 }
 0x125   : > { %v384_v26 = vpop.eup %383 }
 0x126   : > { %v386_v27 = vpop.eup %385  ;;  %v180_v28 = vmul.f32 2.0, %v384_v26  ;;  %v173_v29 = vpop.xlane.xlu1 %172 }
 0x127   : > { %v178_v30 = vmul.f32 2.0, %v386_v27  ;;  %387 = vrcp.f32 %v173_v29  ;;  %v169_v31 = vpop.xlane.xlu2 %168 }
 0x128   : > { %v184_v32 = vmul.f32 %v376_v18, %v180_v28  ;;  %389 = vrcp.f32 %v169_v31 }
 0x129   : > { %v182_v33 = vmul.f32 %v378_v21, %v178_v30 }
 0x12a   : > { %v205_v34 = vmul.f32 0.0625, %v184_v32  ;;  %v209_v38 = vshrl.u32 %v184_v32, 24  ;;  %v204_v40 = vand.u32 2147483647, %v184_v32  ;;  %vm207_vm0 = vweird.f32 %v184_v32 }
 0x12b   : > { %v187_v36 = vmul.f32 0.0625, %v182_v33  ;;  %v191_v42 = vshrl.u32 %v182_v33, 24  ;;  %v186_v45 = vand.u32 2147483647, %v182_v33  ;;  %vm189_vm1 = vweird.f32 %v182_v33 }
 0x12c   : > { %v206_v43 = vcvt.f32.f8e4m3b11 %v205_v34  ;;  %v210_v48 = vand.u32 128, %v209_v38  ;;  %vm597_vm2 = vcmp.le.f32.partialorder %v204_v40, 0.0009765625 }
 0x12d   : > { %v388_v35 = vpop.eup %387  ;;  %v188_v46 = vcvt.f32.f8e4m3b11 %v187_v36  ;;  %v192_v56 = vand.u32 128, %v191_v42  ;;  %vm193_vm4 = vcmp.le.f32.partialorder %v186_v45, 0.0009765625 }
 0x12e   : > { %v390_v37 = vpop.eup %389  ;;  %v181_v39 = vmul.f32 2.0, %v388_v35  ;;  %v208_v57 = vsel %vm207_vm0, 127, %v206_v43 }
 0x12f   : > { %v179_v41 = vmul.f32 2.0, %v390_v37  ;;  %v190_v60 = vsel %vm189_vm1, 127, %v188_v46  ;;  %v212_v1 = vsel %vm597_vm2, %v210_v48, %v208_v57 }
 0x130   : > { %v185_v44 = vmul.f32 %v380_v22, %v181_v39  ;;  %v194_v3 = vsel %vm193_vm4, %v192_v56, %v190_v60 }
 0x131   : > { %v183_v47 = vmul.f32 %v382_v23, %v179_v41 }
 0x132   : > { %v213_v49 = vand.u32 2147483647, %v185_v44  ;;  %v214_v50 = vmul.f32 0.0625, %v185_v44  ;;  %v218_v51 = vshrl.u32 %v185_v44, 24  ;;  %vm216_vm3 = vweird.f32 %v185_v44 }
 0x133   : > { %v195_v53 = vand.u32 2147483647, %v183_v47  ;;  %v196_v54 = vmul.f32 0.0625, %v183_v47  ;;  %v200_v55 = vshrl.u32 %v183_v47, 24  ;;  %vm198_vm6 = vweird.f32 %v183_v47 }
 0x134   : > { %v215_v58 = vcvt.f32.f8e4m3b11 %v214_v50  ;;  %v219_v59 = vand.u32 128, %v218_v51  ;;  %vm220_vm5 = vcmp.le.f32.partialorder %v213_v49, 0.0009765625 }
 0x135   : > { %v197_v61 = vcvt.f32.f8e4m3b11 %v196_v54  ;;  %v201_v62 = vand.u32 128, %v200_v55  ;;  %vm202_vm7 = vcmp.le.f32.partialorder %v195_v53, 0.0009765625 }
 0x136   : > { %v217_v63 = vsel %vm216_vm3, 127, %v215_v58 }
 0x137   : > { %v199_v0 = vsel %vm198_vm6, 127, %v197_v61  ;;  %v221_v2 = vsel %vm220_vm5, %v219_v59, %v217_v63 }
 0x138   : > { %v203_v4 = vsel %vm202_vm7, %v201_v62, %v199_v0  ;;  %v223_v5 = vpack.c.b16 %v221_v2, %v212_v1 }
 0x139   : > { %v222_v6 = vpack.c.b16 %v203_v4, %v194_v3 }
 0x13b   : > { %v224_v7 = vpack.c.b8 %v223_v5, %v222_v6 }
 0x13d   : > { %226 = vst [vmem:[%s136_s28] sm:$0xff] %v224_v7 }
 0x13e   : > { %448 = shalt.err (!%p445_p4)
}
 0x13f   : > { %329 = dma.vmem_to_hbm [thread:$0]  (%p551_p11), %s241_s29, 128, %s243_s30, %s228_s2  }
 0x140 PF: > { %s254_s20 = sand.u32 1, %s475_s6   ;;  %p646_p7 = scmp.ge.s32.totalorder %s487_s9, 2 }
 0x141   : > { %s255_s21 = scalar_lea.sflag [#allocation4], %s254_s20 }
 0x142   : > { %p336_p5 = pnand %p646_p7, %p555_p12 }
 0x144   : > { %p337_p8 = pneg %p336_p5 }
 0x146   : > { %470 = dma.done.wait (%p337_p8), %s255_s21, 128  }
 0x147   : > { %472 = vsyncadd (%p337_p8), %s255_s21, 4294967168  ;;  %p14_p10 = scmp.ge.s32.totalorder %s526_s12, 4   ;;  %s647_s6 = smov %s479_s7 }
 0x148   : > { %s648_s7 = smov %s483_s8  ;;  %s649_s8 = smov %s538_s15 }
 0x149   : > { %s650_s9 = smov %s526_s12  ;;  %16 = sbr.rel (!%p14_p10) target bundleno = 5 (0x5), region = 69 }
 0x14e   :  { %261 = vsyncpa [#allocation3], 1 }
 0x14f   :  { %263 = vsyncpa [#allocation3 + $0x1], 1 }
 0x150   :  { %264 = vsyncpa [#allocation4], 1 }
 0x151   :  { %266 = vsyncpa [#allocation4 + $0x1], 1 }

</bundles_post_ra>
